<compile_context>
chip_gen: v6e
topology: v6e:2x2x1
jax: 0.10.0
libtpu: 0.0.40
codegen_flags: <defaults>
</compile_context>

<pallas_src>
import math

import jax
import jax.numpy as jnp
from jax.experimental import pallas as pl
from jax.experimental.pallas import tpu as pltpu


_LANE = 128
# ~2 MiB per block: measured streaming-copy data puts 1-4 MiB blocks at ~85-86%
# of HBM roofline; in+out double-buffered = 8 MiB VMEM, safe on v5e/v6e/v7x.
_TARGET_BLOCK_BYTES = 2 * 1024 * 1024
_ROW_ALIGN = 32  # packed-sublane multiple for f32(8)/bf16(16)/int8(32)


def _choose_tile_rows(rows: int, itemsize: int) -> int:
    """Pick a lane-dense tile height: ~2 MiB blocks, >= ~4 grid steps when possible."""
    # Size by bytes, not rows.
    t = max(_TARGET_BLOCK_BYTES // (_LANE * itemsize), 8)
    # Keep >= ~4 grid steps for medium tensors so both v7x TensorCores get work,
    # but never shrink blocks below 512 rows (>= 256 KiB for f32).
    quarter = -(-rows // 4)
    quarter = -(-quarter // _ROW_ALIGN) * _ROW_ALIGN
    t = min(t, max(quarter, 512))
    t = max((t // _ROW_ALIGN) * _ROW_ALIGN, 8)
    if rows <= t:
        return rows  # single block == full array dims: always a legal block shape
    return t


# --------------------------------------------------------------------------
# Kernels
# --------------------------------------------------------------------------
def _grl_identity_kernel(x_ref, o_ref):
    # Pure streaming copy; the astype is a no-op when dtypes match and folds the
    # int->f32 promotion into the same HBM pass when they don't.
    o_ref[...] = x_ref[...].astype(o_ref.dtype)


def _grl_backward_kernel(neg_coeff_ref, g_ref, o_ref):
    # neg_coeff_ref: (1,) f32 scalar in SMEM holding -coeff (negated on the host).
    c = neg_coeff_ref[0].astype(g_ref.dtype)  # one scalar cast per tile
    o_ref[...] = g_ref[...] * c               # multiply in the grad's native dtype


# --------------------------------------------------------------------------
# Wrappers
# --------------------------------------------------------------------------
def grl_forward(x: jax.Array, *, use_kernel: bool = True) -> jax.Array:
    """GRL forward: identity (PyTorch `input * 1.0`)."""
    # PyTorch `input * 1.0` promotes integer tensors to float32.
    out_dtype = x.dtype if jnp.issubdtype(x.dtype, jnp.floating) else jnp.float32
    total = x.size

    if not use_kernel or total == 0 or total % _LANE != 0:
        # Production / unaligned-tail path: exact identity (or single-pass cast),
        # no HBM round-trip at all.
        return x if out_dtype == x.dtype else x.astype(out_dtype)

    rows = total // _LANE
    tile_rows = _choose_tile_rows(rows, jnp.dtype(x.dtype).itemsize)
    x2d = x.reshape(rows, _LANE)
    # Alias input buffer into the output when dtypes match (no extra HBM alloc).
    alias = {0: 0} if out_dtype == x.dtype else {}

    out2d = pl.pallas_call(
        _grl_identity_kernel,
        out_shape=jax.ShapeDtypeStruct((rows, _LANE), out_dtype),
        grid_spec=pltpu.PrefetchScalarGridSpec(
            num_scalar_prefetch=0,
            grid=(pl.cdiv(rows, tile_rows),),
            in_specs=[pl.BlockSpec((tile_rows, _LANE), lambda i: (i, 0))],
            out_specs=pl.BlockSpec((tile_rows, _LANE), lambda i: (i, 0)),
        ),
        input_output_aliases=alias,
        compiler_params=pltpu.CompilerParams(
            dimension_semantics=("parallel",)
        ),
    )(x2d)
    return out2d.reshape(x.shape)


def grl_backward(grad_output: jax.Array, coeff: float, *, use_kernel: bool = True) -> jax.Array:
    """GRL backward: -coeff * gradOutput."""
    if not jnp.issubdtype(grad_output.dtype, jnp.floating):
        # Integer grads (practically never): single fused XLA pass, float result,
        # matching PyTorch's float promotion.
        return (-jnp.float32(coeff)) * grad_output.astype(jnp.float32)

    dtype = grad_output.dtype
    total = grad_output.size
    if not use_kernel or total == 0 or total % _LANE != 0:
        # Plain XLA: fuses into the surrounding graph with no extra HBM pass.
        return ((-jnp.float32(coeff)).astype(dtype)) * grad_output

    rows = total // _LANE
    tile_rows = _choose_tile_rows(rows, jnp.dtype(dtype).itemsize)
    g2d = grad_output.reshape(rows, _LANE)
    neg_coeff = jnp.asarray([-float(coeff)], dtype=jnp.float32)  # host-side negation

    out2d = pl.pallas_call(
        _grl_backward_kernel,
        out_shape=jax.ShapeDtypeStruct((rows, _LANE), dtype),
        grid_spec=pltpu.PrefetchScalarGridSpec(
            num_scalar_prefetch=0,
            grid=(pl.cdiv(rows, tile_rows),),
            in_specs=[
                pl.BlockSpec(memory_space=pltpu.MemorySpace.SMEM),   # -coeff scalar
                pl.BlockSpec((tile_rows, _LANE), lambda i: (i, 0)),  # grad tile
            ],
            out_specs=pl.BlockSpec((tile_rows, _LANE), lambda i: (i, 0)),
        ),
        input_output_aliases={1: 0},  # grad buffer aliased into the output
        compiler_params=pltpu.CompilerParams(
            dimension_semantics=("parallel",)
        ),
    )(neg_coeff, g2d)
    return out2d.reshape(grad_output.shape)


# --------------------------------------------------------------------------
# Module mirror (host-side scalar bookkeeping kept as plain Python, as in PyTorch)
# --------------------------------------------------------------------------
class GRL:
    def __init__(self, max_iter: int, use_pallas: bool = True):
        self.iter_num = 0
        self.alpha = 10
        self.low = 0.0
        self.high = 1.0
        self.max_iter = max_iter
        self.use_pallas = use_pallas  # production: set False -> forward returns x as-is

    def forward(self, x: jax.Array) -> jax.Array:
        self.iter_num += 1
        return grl_forward(x, use_kernel=self.use_pallas)

    def backward(self, grad_output: jax.Array) -> jax.Array:
        # TODO(synk): coeff schedule is pure Python scalar math (no tensor op) and stays host-side.
        coeff = (
            2.0 * (self.high - self.low)
            / (1.0 + math.exp(-self.alpha * self.iter_num / self.max_iter))
            - (self.high - self.low)
            + self.low
        )
        return grl_backward(grad_output, coeff, use_kernel=self.use_pallas)


if __name__ == "__main__":
    key = jax.random.PRNGKey(0)
    kx, kg = jax.random.split(key)
    # NCHW feature map consistent with a conv feature fed into GRL.
    x = jax.random.normal(kx, (2, 4, 16, 16), dtype=jnp.float32)
    g = jax.random.normal(kg, (2, 4, 16, 16), dtype=jnp.float32)

    grl = GRL(max_iter=100)

    # Forward: exact identity via the Pallas copy path.
    y = jax.block_until_ready(grl.forward(x))
    assert y.shape == x.shape and y.dtype == x.dtype
    assert bool(jnp.all(y == x))
    assert grl.iter_num == 1

    # Backward: -coeff * grad with coeff from the schedule at iter_num == 1.
    coeff_ref = (
        2.0 * (1.0 - 0.0) / (1.0 + math.exp(-10 * 1 / 100)) - (1.0 - 0.0) + 0.0
    )
    ref = (-coeff_ref) * g  # compute reference before the kernel call
    dg = jax.block_until_ready(grl.backward(g))
    assert dg.shape == g.shape and dg.dtype == g.dtype
    assert bool(jnp.allclose(dg, ref, rtol=1e-6, atol=1e-6))

    print("KERNEL_OK")
</pallas_src>

<mosaic_0001>
module attributes {stable_mosaic.version = 11 : i64} {
  func.func @_grl_identity_kernel(%arg0: i32, %arg1: memref<16x128xf32, #tpu.memory_space<vmem>>, %arg2: memref<16x128xf32, #tpu.memory_space<vmem>>) attributes {dimension_semantics = [#tpu.dimension_semantics<parallel>], iteration_bounds = array<i64: 1>, scalar_prefetch = 0 : i64, scratch_operands = 0 : i64, tpu.core_type = #tpu.core_type<tc>, window_params = [{transform_indices = @transform_0, window_bounds = array<i64: 16, 128>}, {transform_indices = @transform_1, window_bounds = array<i64: 16, 128>}]} {
    %c0 = arith.constant 0 : index
    %c0_0 = arith.constant 0 : index
    %0 = vector.load %arg1[%c0, %c0_0] : memref<16x128xf32, #tpu.memory_space<vmem>>, vector<16x128xf32>
    %c0_1 = arith.constant 0 : index
    %c0_2 = arith.constant 0 : index
    %1 = vector.load %arg2[%c0_1, %c0_2] : memref<16x128xf32, #tpu.memory_space<vmem>>, vector<16x128xf32>
    tpu.vector_store %arg2[%c0_1, %c0_2], %0 {strides = array<i32>} : memref<16x128xf32, #tpu.memory_space<vmem>>, vector<16x128xf32>,
    return
  }
  func.func @transform_0(%arg0: i32) -> (i32, i32) {
    %c0_i32 = arith.constant 0 : i32
    %c0_i32_0 = arith.constant 0 : i32
    return %arg0, %c0_i32 : i32, i32
  }
  func.func @transform_1(%arg0: i32) -> (i32, i32) {
    %c0_i32 = arith.constant 0 : i32
    %c0_i32_0 = arith.constant 0 : i32
    return %arg0, %c0_i32 : i32, i32
  }
}

</mosaic_0001>

<bundles_post_ra>
// kernel: tpu_custom_call.1
= control target key start
LH: loop header
LB: loop body
LE: loop exit
PB: predicated region body
PF: predicated region fallthrough
CT: control target
= control target key end

     0   :  { %6 = vsyncpa [#allocation3], 0  ;;  %s112_s0 = inlined_call_operand.hbm [shape: f32[16,128], index: 0, kind: input, shape index: {}, may-alias: {0,1}]   ;;  %s113_s1 = inlined_call_operand.hbm [shape: f32[16,128], index: 1, kind: output, shape index: {}, may-alias: {0,1}]  }
   0x1   :  { %7 = vsyncpa [#allocation4], 0  ;;  %s92_s6 = smov [#allocation2]  }
   0x2   :  { %s13_s7 = sshll.u32 %s92_s6, 4  ;;  %s14_s7 = int_to_ptr.vmem [resolvable:$true] %s13_s7 }
   0x3   :  { %s56_s8 = scalar_lea.vmem %s14_s7, 256  ;;  %p61_p1 = scmp.lt.s32.totalorder %s14_s7, %s14_s7 }
   0x4   :  { %p57_p0 = scmp.ne.s32.totalorder %s14_s7, %s56_s8  ;;  %p62_p2 = scmp.lt.s32.totalorder %s56_s8, %s56_s8 }
   0x6   :  { %p63_p3 = por %p62_p2, %p61_p1 }
   0x8   :  { %p64_p4 = pnand %p63_p3, %p57_p0 }
   0xa   :  { %67 = shalt.err (!%p64_p4)
}
   0xb   :  { %s93_s9 = smov 128   ;;  %s94_s10 = smov 8  }
   0xc   :  { %19 = dma.hbm_to_vmem [thread:$0]  %s112_s0, 256, %s14_s7, [#allocation3], %s93_s9, %s93_s9, %s94_s10  }
   0xd   :  { %88 = dma.done.wait [#allocation3], 256  }
   0xe   :  { %89 = vsyncadd [#allocation3], 4294967040  ;;  %s95_s13 = smov [#allocation5]   ;;  %v23_v0 = vld [vmem:[#allocation2] sm:$0xff]  ;;  %v24_v1 = vld [vmem:[#allocation2 + $0x8] sm:$0xff] }
   0xf   :  { %s32_s14 = sshll.u32 %s95_s13, 4  ;;  %25 = vst [vmem:[#allocation5] sm:$0xff] %v23_v0  ;;  %26 = vst [vmem:[#allocation5 + $0x8] sm:$0xff] %v24_v1  ;;  %s33_s14 = int_to_ptr.vmem [resolvable:$true] %s32_s14 }
  0x10   :  { %s68_s15 = scalar_lea.vmem %s33_s14, 256  ;;  %p73_p6 = scmp.lt.s32.totalorder %s33_s14, %s33_s14 }
  0x11   :  { %p69_p5 = scmp.ne.s32.totalorder %s33_s14, %s68_s15  ;;  %p74_p7 = scmp.lt.s32.totalorder %s68_s15, %s68_s15 }
  0x13   :  { %p75_p8 = por %p74_p7, %p73_p6 }
  0x15   :  { %p76_p9 = pnand %p75_p8, %p69_p5 }
  0x17   :  { %79 = shalt.err (!%p76_p9)
}
  0x18   :  { %38 = dma.vmem_to_hbm [thread:$0]  %s33_s14, 256, %s113_s1, [#allocation4], %s93_s9, %s93_s9, %s94_s10  }
  0x19   :  { %90 = dma.done.wait [#allocation4], 256  }
  0x1a   :  { %91 = vsyncadd [#allocation4], 4294967040 }
  0x1b   :  { %42 = vsyncpa [#allocation3], 1 }
  0x1c   :  { %43 = vsyncpa [#allocation4], 1 }

</bundles_post_ra>
